<compile_context>
chip_gen: v7x
topology: tpu7x:2x2x1
jax: 0.10.0
libtpu: 0.0.40
codegen_flags: <defaults>
</compile_context>

<pallas_src>
import functools

import jax
import jax.numpy as jnp
from jax.experimental import pallas as pl
from jax.experimental.pallas import tpu as pltpu


def _disc_kernel(z1_ref, z2_ref, w1_ref, b1_ref, w2_ref, b2_ref, o_ref):
    # Fused first layer: concat on the lane axis (XLU), cast to bf16 (MXU
    # native), single K=2L dot with f32 accumulation.
    z = jnp.concatenate([z1_ref[...], z2_ref[...]], axis=-1)      # [TB, 2L] f32
    h = jnp.dot(z.astype(jnp.bfloat16), w1_ref[...],
                preferred_element_type=jnp.float32)               # [TB, H] f32
    h = jnp.maximum(h + b1_ref[...], 0.0)                         # ReLU
    # Second layer (H -> 1) as a VPU multiply + XLU lane reduction (keeps the
    # N=1 matmul off the MXU and avoids lane-padding a [H,1] weight).
    logit = jnp.sum(h * w2_ref[...], axis=-1, keepdims=True)      # [TB, 1]
    logit = logit + b2_ref[0, 0]                                  # SMEM scalar
    o_ref[...] = jax.nn.sigmoid(logit)


@functools.partial(jax.jit, static_argnames=("block_b",))
def cross_modal_discriminator(z1, z2, w1, b1, w2, b2, block_b=2048):
    """z1, z2: [B, L]. w1: [2L, H], b1: [H], w2: [H, 1], b2: [1]
    (weights stored [in, out], i.e. PyTorch W.T). Returns [B, 1] float32."""
    B, L = z1.shape
    H = w1.shape[1]

    z1 = z1.astype(jnp.float32)
    z2 = z2.astype(jnp.float32)
    w1_bf = w1.astype(jnp.bfloat16)                   # [2L, H], MXU-native
    b1_row = b1.reshape(1, H).astype(jnp.float32)     # [1, H]
    w2_row = w2.reshape(1, H).astype(jnp.float32)     # [H, 1] -> [1, H] row
    b2_s = b2.reshape(1, 1).astype(jnp.float32)       # scalar -> SMEM

    # Batch tiling without any wrapper-side padding:
    #   * if B <= block_b: one block equal to the full batch dim (allowed for
    #     any B by the (8,128) rule's "equals the array dim" escape hatch);
    #   * else: block_b-row tiles (multiple of 8); a ragged last tile is
    #     handled by Pallas (OOB rows masked on writeback).
    tb = min(block_b, B)
    grid = (pl.cdiv(B, tb),)

    cost = pl.CostEstimate(
        flops=2 * B * (2 * L) * H + 2 * B * H,
        transcendentals=B,                               # sigmoid exp
        bytes_accessed=(2 * B * L * 4                    # z1, z2 (f32)
                        + 2 * L * H * 2                  # w1 (bf16)
                        + 2 * H * 4 + 4                  # b1, w2 row, b2
                        + B * 4),                        # output
    )

    out = pl.pallas_call(
        _disc_kernel,
        out_shape=jax.ShapeDtypeStruct((B, 1), jnp.float32),
        grid=grid,
        in_specs=[
            pl.BlockSpec((tb, L), lambda i: (i, 0)),              # z1 tile
            pl.BlockSpec((tb, L), lambda i: (i, 0)),              # z2 tile
            pl.BlockSpec((2 * L, H), lambda i: (0, 0)),           # w1 (resident)
            pl.BlockSpec((1, H), lambda i: (0, 0)),               # b1 (resident)
            pl.BlockSpec((1, H), lambda i: (0, 0)),               # w2 row (resident)
            pl.BlockSpec((1, 1), lambda i: (0, 0),
                         memory_space=pltpu.MemorySpace.SMEM),    # b2 scalar
        ],
        out_specs=pl.BlockSpec((tb, 1), lambda i: (i, 0)),
        # "parallel" lets v7x's two TensorCores split the batch grid; it is a
        # no-op on single-TC v5e/v6e.  (Keep b_pad//tb >= 2 on v7x for big B.)
        compiler_params=pltpu.CompilerParams(
            dimension_semantics=("parallel",)),
        cost_estimate=cost,
    )(z1, z2, w1_bf, b1_row, w2_row, b2_s)
    return out


def init_params(key, latent_dim, hidden=512):
    """Deterministic synthetic init (PyTorch-style uniform fan-in bounds).
    Weights stored [in_features, out_features] (transposed vs. nn.Linear)."""
    k1, k2, k3, k4 = jax.random.split(key, 4)
    in1 = 2 * latent_dim
    bound1 = 1.0 / jnp.sqrt(in1)
    bound2 = 1.0 / jnp.sqrt(hidden)
    w1 = jax.random.uniform(k1, (in1, hidden), jnp.float32, -bound1, bound1)
    b1 = jax.random.uniform(k2, (hidden,), jnp.float32, -bound1, bound1)
    w2 = jax.random.uniform(k3, (hidden, 1), jnp.float32, -bound2, bound2)
    b2 = jax.random.uniform(k4, (1,), jnp.float32, -bound2, bound2)
    return w1, b1, w2, b2


if __name__ == "__main__":
    key = jax.random.PRNGKey(0)
    kz1, kz2, kz3, kz4, kp = jax.random.split(key, 5)

    latent_dim, hidden = 32, 512
    w1, b1, w2, b2 = init_params(kp, latent_dim, hidden)

    def reference(a, b):
        x = jnp.concatenate([a, b], axis=1)
        return jax.nn.sigmoid(jnp.maximum(x @ w1 + b1[None, :], 0.0) @ w2 + b2[None, :])

    # bf16 MXU path -> relaxed tolerance on the post-sigmoid output.
    TOL = 1e-2

    # Small-batch check (single grid step), matches the module's typical use.
    B = 8
    z1 = jax.random.normal(kz1, (B, latent_dim), jnp.float32)
    z2 = jax.random.normal(kz2, (B, latent_dim), jnp.float32)
    out = jax.block_until_ready(cross_modal_discriminator(z1, z2, w1, b1, w2, b2))
    assert out.shape == (B, 1)
    assert jnp.allclose(out, reference(z1, z2), atol=TOL), "small-batch mismatch"

    # Larger batch, B not a multiple of 8:
    #   (a) default tile -> single full-batch block (no padding, no ragged tile)
    #   (b) small tile   -> multi-step grid with a ragged last tile
    B2 = 700
    z1b = jax.random.normal(kz3, (B2, latent_dim), jnp.float32)
    z2b = jax.random.normal(kz4, (B2, latent_dim), jnp.float32)
    ref2 = reference(z1b, z2b)

    out_a = jax.block_until_ready(cross_modal_discriminator(z1b, z2b, w1, b1, w2, b2))
    assert out_a.shape == (B2, 1)
    assert jnp.allclose(out_a, ref2, atol=TOL), "full-batch-block mismatch"

    out_b = jax.block_until_ready(
        cross_modal_discriminator(z1b, z2b, w1, b1, w2, b2, block_b=256))
    assert out_b.shape == (B2, 1)
    assert jnp.allclose(out_b, ref2, atol=TOL), "ragged-grid mismatch"

    print("KERNEL_OK")
</pallas_src>

<mosaic_0001>
module attributes {stable_mosaic.version = 11 : i64} {
  func.func @_disc_kernel(%arg0: i32, %arg1: memref<8x32xf32, #tpu.memory_space<vmem>>, %arg2: memref<8x32xf32, #tpu.memory_space<vmem>>, %arg3: memref<64x512xbf16, #tpu.memory_space<vmem>>, %arg4: memref<1x512xf32, #tpu.memory_space<vmem>>, %arg5: memref<1x512xf32, #tpu.memory_space<vmem>>, %arg6: memref<1x1xf32, #tpu.memory_space<smem>>, %arg7: memref<8x1xf32, #tpu.memory_space<vmem>>) attributes {dimension_semantics = [#tpu.dimension_semantics<parallel>], iteration_bounds = array<i64: 1>, scalar_prefetch = 0 : i64, scratch_operands = 0 : i64, tpu.core_type = #tpu.core_type<tc>, window_params = [{transform_indices = @transform_0, window_bounds = array<i64: 8, 32>}, {transform_indices = @transform_1, window_bounds = array<i64: 8, 32>}, {pipeline_mode = #tpu.pipeline_mode<synchronous>, transform_indices = @transform_2, window_bounds = array<i64: 64, 512>}, {pipeline_mode = #tpu.pipeline_mode<synchronous>, transform_indices = @transform_3, window_bounds = array<i64: 1, 512>}, {pipeline_mode = #tpu.pipeline_mode<synchronous>, transform_indices = @transform_4, window_bounds = array<i64: 1, 512>}, {transform_indices = @transform_5, window_bounds = array<i64: 1, 1>}, {transform_indices = @transform_6, window_bounds = array<i64: 8, 1>}]} {
    %c0 = arith.constant 0 : index
    %c0_0 = arith.constant 0 : index
    %0 = vector.load %arg1[%c0, %c0_0] : memref<8x32xf32, #tpu.memory_space<vmem>>, vector<8x32xf32>
    %c0_1 = arith.constant 0 : index
    %c0_2 = arith.constant 0 : index
    %1 = vector.load %arg2[%c0_1, %c0_2] : memref<8x32xf32, #tpu.memory_space<vmem>>, vector<8x32xf32>
    %2 = tpu.concatenate %0, %1 in 1 : vector<8x32xf32>, vector<8x32xf32> -> vector<8x64xf32>
    %3 = arith.truncf %2 : vector<8x64xf32> to vector<8x64xbf16>
    %c0_3 = arith.constant 0 : index
    %c0_4 = arith.constant 0 : index
    %4 = vector.load %arg3[%c0_3, %c0_4] : memref<64x512xbf16, #tpu.memory_space<vmem>>, vector<64x512xbf16>
    %cst = arith.constant dense<0.000000e+00> : vector<8x512xf32>
    %5 = tpu.matmul %3, %4, %cst {dimension_numbers = #tpu.dot_dimension_numbers<[1], [0], [0], [1], [0, 0, 1, 1], [], []>} : vector<8x64xbf16>, vector<64x512xbf16>, vector<8x512xf32> -> vector<8x512xf32>
    %c0_5 = arith.constant 0 : index
    %c0_6 = arith.constant 0 : index
    %6 = vector.load %arg4[%c0_5, %c0_6] : memref<1x512xf32, #tpu.memory_space<vmem>>, vector<1x512xf32>
    %7 = vector.broadcast %6 : vector<1x512xf32> to vector<8x512xf32>
    %8 = arith.addf %5, %7 : vector<8x512xf32>
    %cst_7 = arith.constant 0.000000e+00 : f32
    %9 = vector.broadcast %cst_7 : f32 to vector<8x512xf32>
    %10 = arith.maximumf %8, %9 : vector<8x512xf32>
    %c0_8 = arith.constant 0 : index
    %c0_9 = arith.constant 0 : index
    %11 = vector.load %arg5[%c0_8, %c0_9] : memref<1x512xf32, #tpu.memory_space<vmem>>, vector<1x512xf32>
    %12 = vector.broadcast %11 : vector<1x512xf32> to vector<8x512xf32>
    %13 = arith.mulf %10, %12 : vector<8x512xf32>
    %cst_10 = arith.constant dense<0.000000e+00> : vector<8xf32>
    %14 = vector.multi_reduction <add>, %13, %cst_10 [1] : vector<8x512xf32> to vector<8xf32>
    %15 = vector.shape_cast %14 : vector<8xf32> to vector<8x1xf32>
    %c0_11 = arith.constant 0 : index
    %c0_12 = arith.constant 0 : index
    %16 = memref.load %arg6[%c0_11, %c0_12] : memref<1x1xf32, #tpu.memory_space<smem>>
    %17 = vector.broadcast %16 : f32 to vector<8x1xf32>
    %18 = arith.addf %15, %17 : vector<8x1xf32>
    %19 = arith.negf %18 : vector<8x1xf32>
    %20 = math.exp %19 : vector<8x1xf32>
    %cst_13 = arith.constant 1.000000e+00 : f32
    %21 = vector.broadcast %cst_13 : f32 to vector<8x1xf32>
    %22 = arith.addf %21, %20 : vector<8x1xf32>
    %23 = arith.divf %21, %22 : vector<8x1xf32>
    %c0_14 = arith.constant 0 : index
    %c0_15 = arith.constant 0 : index
    %24 = vector.load %arg7[%c0_14, %c0_15] : memref<8x1xf32, #tpu.memory_space<vmem>>, vector<8x1xf32>
    tpu.vector_store %arg7[%c0_14, %c0_15], %23 {strides = array<i32>} : memref<8x1xf32, #tpu.memory_space<vmem>>, vector<8x1xf32>,
    return
  }
  func.func @transform_0(%arg0: i32) -> (i32, i32) {
    %c0_i32 = arith.constant 0 : i32
    %c0_i32_0 = arith.constant 0 : i32
    return %arg0, %c0_i32 : i32, i32
  }
  func.func @transform_1(%arg0: i32) -> (i32, i32) {
    %c0_i32 = arith.constant 0 : i32
    %c0_i32_0 = arith.constant 0 : i32
    return %arg0, %c0_i32 : i32, i32
  }
  func.func @transform_2(%arg0: i32) -> (i32, i32) {
    %c0_i32 = arith.constant 0 : i32
    %c0_i32_0 = arith.constant 0 : i32
    %c0_i32_1 = arith.constant 0 : i32
    return %c0_i32, %c0_i32_0 : i32, i32
  }
  func.func @transform_3(%arg0: i32) -> (i32, i32) {
    %c0_i32 = arith.constant 0 : i32
    %c0_i32_0 = arith.constant 0 : i32
    %c0_i32_1 = arith.constant 0 : i32
    return %c0_i32, %c0_i32_0 : i32, i32
  }
  func.func @transform_4(%arg0: i32) -> (i32, i32) {
    %c0_i32 = arith.constant 0 : i32
    %c0_i32_0 = arith.constant 0 : i32
    %c0_i32_1 = arith.constant 0 : i32
    return %c0_i32, %c0_i32_0 : i32, i32
  }
  func.func @transform_5(%arg0: i32) -> (i32, i32) {
    %c0_i32 = arith.constant 0 : i32
    %c0_i32_0 = arith.constant 0 : i32
    %c0_i32_1 = arith.constant 0 : i32
    return %c0_i32, %c0_i32_0 : i32, i32
  }
  func.func @transform_6(%arg0: i32) -> (i32, i32) {
    %c0_i32 = arith.constant 0 : i32
    %c0_i32_0 = arith.constant 0 : i32
    return %arg0, %c0_i32 : i32, i32
  }
}

</mosaic_0001>

<bundles_post_ra>
// kernel: cross_modal_discriminator.1
= control target key start
LH: loop header
LB: loop body
LE: loop exit
PB: predicated region body
PF: predicated region fallthrough
CT: control target
= control target key end

     0   :  { %v337_v1 = vmov 0   ;;  %s338_s23 = smov 32   ;;  %vm31_vm0 = vcmask 261120   ;;  %vm152_vm1 = vcmask 523264   ;;  %v52_v22 = vlaneseq  ;;  %s440_s1 = inlined_call_operand.vmem [shape: f32[8,32], index: 1, kind: input, shape index: {}]   ;;  %s441_s2 = inlined_call_operand.vmem [shape: bf16[64,512], index: 2, kind: input, shape index: {}]   ;;  %s442_s0 = inlined_call_operand.vmem [shape: f32[8,32], index: 0, kind: input, shape index: {}]   ;;  %s443_s3 = inlined_call_operand.vmem [shape: f32[1,512], index: 3, kind: input, shape index: {}]   ;;  %s444_s4 = inlined_call_operand.vmem [shape: f32[1,512], index: 4, kind: input, shape index: {}]   ;;  %s445_s5 = inlined_call_operand.<no memory space> [shape: f32[1,1], index: 5, kind: input, shape index: {}]   ;;  %s446_s6 = inlined_call_operand.vmem [shape: f32[8,1], index: 6, kind: output, shape index: {}]  }
   0x1   :  { %v26_v0 = vld [vmem:[%s440_s1] sm:$0xff]  ;;  %188 = vmatprep.mubr.bf16.mxu0 %v337_v1  ;;  %229 = vmatprep.mubr.bf16.mxu1 %v337_v1  ;;  %v311_v3 = vld [vmem:[%s441_s2 + $0xc] ss:$16 sps:$4 sm:$0xff]   ;;  %v314_v5 = vld [vmem:[%s441_s2 + $0x8] ss:$16 sps:$4 sm:$0xff]   ;;  %v274_v61 = vstv %s445_s5  ;;  %vm282_vm2 = vcmask 7168  }
   0x2   :  { %28 = vrot.lane.b32.xlu0 %v26_v0, %s338_s23  ;;  %v309_v2 = vld [vmem:[%s441_s2 + $0x4] ss:$16 sps:$4 sm:$0xff]   ;;  %v313_v4 = vld [vmem:[%s441_s2] ss:$16 sps:$4 sm:$0xff]   ;;  %197 = vmatprep.subr.bf16.mxu1 %v311_v3  ;;  %v317_v7 = vld [vmem:[%s441_s2 + $0x2c] ss:$16 sps:$4 sm:$0xff]  }
   0x3   :  { %156 = vmatprep.subr.bf16.mxu0 %v309_v2  ;;  %v315_v6 = vld [vmem:[%s441_s2 + $0x24] ss:$16 sps:$4 sm:$0xff]   ;;  %198 = vmatpush1.bf16.msra.mxu1 %v314_v5  ;;  %v319_v8 = vld [vmem:[%s441_s2 + $0x20] ss:$16 sps:$4 sm:$0xff]   ;;  %v320_v9 = vld [vmem:[%s441_s2 + $0x28] ss:$16 sps:$4 sm:$0xff]  }
   0x4   :  { %157 = vmatpush1.bf16.msra.mxu0 %v313_v4  ;;  %199 = vmatprep.subr.bf16.mxu1 %v317_v7  ;;  %v321_v10 = vld [vmem:[%s441_s2 + $0x44] ss:$16 sps:$4 sm:$0xff]   ;;  %v323_v11 = vld [vmem:[%s441_s2 + $0x4c] ss:$16 sps:$4 sm:$0xff]   ;;  %v325_v12 = vld [vmem:[%s441_s2 + $0x40] ss:$16 sps:$4 sm:$0xff]  }
   0x5   :  { %158 = vmatprep.subr.bf16.mxu0 %v315_v6  ;;  %v326_v13 = vld [vmem:[%s441_s2 + $0x48] ss:$16 sps:$4 sm:$0xff]   ;;  %v327_v14 = vld [vmem:[%s441_s2 + $0x64] ss:$16 sps:$4 sm:$0xff]   ;;  %v329_v15 = vld [vmem:[%s441_s2 + $0x6c] ss:$16 sps:$4 sm:$0xff]  }
   0x6   :  { %v331_v16 = vld [vmem:[%s441_s2 + $0x60] ss:$16 sps:$4 sm:$0xff]   ;;  %v332_v17 = vld [vmem:[%s441_s2 + $0x68] ss:$16 sps:$4 sm:$0xff]   ;;  %v53_v23 = vshrl.u32 %v52_v22, 7 }
   0x7   :  { %200 = vmatpush1.bf16.msra.mxu1 %v320_v9  ;;  %v25_v18 = vld [vmem:[%s442_s0] sm:$0xff] }
   0x8   :  { %159 = vmatpush1.bf16.msra.mxu0 %v319_v8  ;;  %201 = vmatprep.subr.bf16.mxu1 %v323_v11  ;;  %v54_v24 = vsub.s32 0, %v53_v23  ;;  %v62_v25 = vsub.s32 2, %v53_v23  ;;  %v50_v26 = vld [vmem:[%s443_s3] sm:$0xf]  ;;  %v58_v27 = vsub.s32 1, %v53_v23  ;;  %v66_v28 = vsub.s32 3, %v53_v23 }
   0x9   :  { %160 = vmatprep.subr.bf16.mxu0 %v321_v10  ;;  %v242_v31 = vld [vmem:[%s444_s4] sm:$0xf] }
   0xa   :  { %v55_v29 = vrot.slane %v50_v26, %v54_v24  ;;  %v63_v30 = vrot.slane %v50_v26, %v62_v25  ;;  %v59_v32 = vrot.slane %v50_v26, %v58_v27  ;;  %v67_v33 = vrot.slane %v50_v26, %v66_v28 }
   0xb   :  { %202 = vmatpush1.bf16.msra.mxu1 %v326_v13  ;;  %v247_v37 = vrot.slane %v242_v31, %v54_v24  ;;  %v251_v42 = vrot.slane %v242_v31, %v58_v27  ;;  %v255_v50 = vrot.slane %v242_v31, %v62_v25  ;;  %v259_v55 = vrot.slane %v242_v31, %v66_v28 }
   0xc   :  { %161 = vmatpush1.bf16.msra.mxu0 %v325_v12  ;;  %203 = vmatprep.subr.bf16.mxu1 %v329_v15 }
   0xd   :  { %162 = vmatprep.subr.bf16.mxu0 %v327_v14 }
   0xf   :  { %204 = vmatpush1.bf16.msra.mxu1 %v332_v17 }
  0x10   :  { %163 = vmatpush1.bf16.msra.mxu0 %v331_v16 }
  0x74   :  { %v29_v19 = vpop.permute.xlu0 %28 }
  0x75   :  { %v32_v20 = vsel %vm31_vm0, %v25_v18, %v29_v19 }
  0x76   :  { %v33_v21 = vpack.c.bf16 %v32_v20, %v32_v20 }
  0x78   :  { %304 = vmatmul.mubr.msk.bf16.vlgmr.msra.gmra.mrb[0].mxu0 %vm152_vm1, %v33_v21  ;;  %305 = vmatmul.mubr.msk.bf16.vlgmr.msra.gmra.mrb[0].mxu1 %vm152_vm1, %v33_v21 }
 0x14b   :  { %v190_v34 = vpop.f32.mrb[0].mxu0  ;;  %v231_v35 = vpop.f32.mrb[0].mxu1 }
 0x14c   :  { %v191_v36 = vadd.f32 %v190_v34, %v55_v29  ;;  %v232_v38 = vadd.f32 %v231_v35, %v63_v30  ;;  %v192_v39 = vpop.f32.mrb[1].mxu0  ;;  %v233_v40 = vpop.f32.mrb[1].mxu1 }
 0x14d   :  { %v193_v41 = vadd.f32 %v192_v39, %v59_v32  ;;  %v234_v43 = vadd.f32 %v233_v40, %v67_v33  ;;  %v194_v44 = vpop.f32.mrb[2].mxu0  ;;  %v235_v45 = vpop.f32.mrb[2].mxu1 }
 0x14e   :  { %v238_v46 = vmax.f32 %v191_v36, 0.0  ;;  %v195_v47 = vpop.f32.mrb[3].mxu0  ;;  %v236_v48 = vpop.f32.mrb[3].mxu1  ;;  %v240_v49 = vmax.f32 %v232_v38, 0.0 }
 0x14f   :  { %v239_v51 = vmax.f32 %v193_v41, 0.0  ;;  %v241_v54 = vmax.f32 %v234_v43, 0.0 }
 0x150   :  { %v264_v52 = vmul.f32 %v247_v37, %v238_v46  ;;  %v266_v56 = vmul.f32 %v255_v50, %v240_v49 }
 0x151   :  { %v265_v53 = vmul.f32 %v251_v42, %v239_v51  ;;  %v267_v58 = vmul.f32 %v259_v55, %v241_v54 }
 0x153   :  { %v268_v57 = vadd.f32 %v265_v53, %v264_v52 }
 0x155   :  { %v269_v59 = vadd.f32 %v268_v57, %v266_v56 }
 0x157   :  { %v270_v60 = vadd.f32 %v269_v59, %v267_v58 }
 0x159   :  { %271 = vadd.xlane.f32.xlu0 %v270_v60 }
 0x1e6   :  { %v272_v62 = vpop.xlane.xlu0 %271 }
 0x1e7   :  { %v275_v63 = vadd.f32 %v274_v61, %v272_v62 }
 0x1e9   :  { %v306_v0 = vmul.f32 -1.442695, %v275_v63 }
 0x1eb   :  { %333 = vpow2.f32 %v306_v0 }
 0x1f5   :  { %v334_v1 = vpop.eup %333 }
 0x1f6   :  { %v279_v2 = vadd.f32 1.0, %v334_v1 }
 0x1f8   :  { %335 = vrcp.f32 %v279_v2 }
 0x202   :  { %v336_v3 = vpop.eup %335 }
 0x203   :  { %283 = vst.msk [vmem:[%s446_s6] sm:$0xff] %vm282_vm2, %v336_v3 }

</bundles_post_ra>
